<compile_context>
chip_gen: v7x
topology: tpu7x:2x2x1
jax: 0.10.0
libtpu: 0.0.40
codegen_flags: <defaults>
</compile_context>

<pallas_src>
import functools

import jax
import jax.numpy as jnp
from jax import lax
from jax.experimental import pallas as pl
from jax.experimental.pallas import tpu as pltpu


def _round_up(x, m):
    return (x + m - 1) // m * m


def _infonce_kernel(ans_ref, rat_ref, ft_ref, fs_ref, out_ref, *,
                    nce_t, n_cand, d_pad, true_b, block_b):
    """One grid step = one block of `block_b` batch rows; writes its own partial sums."""
    tile = pl.program_id(0)
    N, D = n_cand, d_pad
    inv_t = jnp.float32(1.0 / nce_t)

    ans = ans_ref[...]  # (BB, 1) int32
    rat = rat_ref[...]  # (BB, 1) int32

    # --- Key gather -----------------------------------------------------------
    # Select-into-accumulator (exactly one candidate matches per row), done in the
    # inputs' native DMA dtype (bf16 stays bf16 on v6e/v7x); one f32 cast per key.
    # Slices are lane-tile aligned because the wrapper pads D to a multiple of 128.
    key_s_nat = fs_ref[:, 0:D]
    key_t_nat = ft_ref[:, 0:D]
    for n in range(1, N):
        key_s_nat = jnp.where(rat == n, fs_ref[:, n * D:(n + 1) * D], key_s_nat)
        key_t_nat = jnp.where(ans == n, ft_ref[:, n * D:(n + 1) * D], key_t_nat)
    key_s = key_s_nat.astype(jnp.float32)   # feats_s[b, rat[b], :]
    key_t = key_t_nat.astype(jnp.float32)   # feats_t[b, ans[b], :]

    # --- Logit columns --------------------------------------------------------
    # Re-slice + re-cast straight from the resident VMEM tile inside the loop so
    # only a couple of (BB, D) f32 slabs are live at once (no 2N-slab list).
    # TODO(synk): on v7x (and bf16-on-v6e) these 2N+1 lane reductions could move
    # onto the idle MXU (lane-tiled key product contracted with a constant
    # block-indicator matrix); kept on VPU/XLU here to preserve exact-f32 argmax
    # ties and 1e-4 parity with the f32 reference.
    cols_s, cols_t = [], []
    for n in range(N):
        ft_n = ft_ref[:, n * D:(n + 1) * D].astype(jnp.float32)
        fs_n = fs_ref[:, n * D:(n + 1) * D].astype(jnp.float32)
        cols_s.append(jnp.sum(ft_n * key_s, axis=-1, keepdims=True) * inv_t)
        cols_t.append(jnp.sum(fs_n * key_t, axis=-1, keepdims=True) * inv_t)

    # Label logit is identical for both CE directions:
    #   logits_s[b, ans[b]] = logits_t[b, rat[b]] = <feats_t[b,ans[b]], feats_s[b,rat[b]]> / t
    label_logit = jnp.sum(key_t * key_s, axis=-1, keepdims=True) * inv_t  # (BB, 1)

    def max_expsum(cols):
        m = cols[0]
        for c in cols[1:]:
            m = jnp.maximum(m, c)
        s = jnp.exp(cols[0] - m)
        for c in cols[1:]:
            s = s + jnp.exp(c - m)
        return m, s

    m_s, s_s = max_expsum(cols_s)
    m_t, s_t = max_expsum(cols_t)

    loss_s = m_s + jnp.log(s_s) - label_logit  # (BB, 1) per-row CE(logits_s/t, ans)
    loss_t = m_t + jnp.log(s_t) - label_logit  # (BB, 1) per-row CE(logits_t/t, rat)

    # max softmax prob = exp(m_s - m_s) / s_s = 1 / s_s (exact, no softmax divide)
    pmax = 1.0 / s_s  # (BB, 1)

    # First-occurrence argmax of logits_s (== argmax of softmax(logits_s)).
    argmax_s = jnp.full_like(ans, N)
    for n in range(N - 1, -1, -1):
        argmax_s = jnp.where(cols_s[n] == m_s, jnp.int32(n), argmax_s)
    acc = (argmax_s == ans).astype(jnp.float32)  # (BB, 1)

    # Mask rows that are pure batch padding.
    row = tile * block_b + lax.broadcasted_iota(jnp.int32, (block_b, 1), 0)
    valid = (row < true_b).astype(jnp.float32)  # (BB, 1)

    loss_s_sum = jnp.sum(loss_s * valid)
    loss_t_sum = jnp.sum(loss_t * valid)
    pmax_sum = jnp.sum(pmax * valid)
    acc_sum = jnp.sum(acc * valid)

    # One dense (1, 8, 128) write per tile: [loss_s, loss_t, pmax, acc] in row 0, lanes 0..3.
    rowi = lax.broadcasted_iota(jnp.int32, out_ref.shape, 1)
    lane = lax.broadcasted_iota(jnp.int32, out_ref.shape, 2)
    r0 = rowi == 0
    out_ref[...] = (jnp.where(r0 & (lane == 0), loss_s_sum, 0.0)
                    + jnp.where(r0 & (lane == 1), loss_t_sum, 0.0)
                    + jnp.where(r0 & (lane == 2), pmax_sum, 0.0)
                    + jnp.where(r0 & (lane == 3), acc_sum, 0.0))


def infonce_loss_2(feats_t, feats_s, answer_label, rationale_label, *,
                   nce_t, beta_2, block_b=None):
    """Pallas-backed equivalent of InfoNCELoss_2.forward (stats returned as jnp scalars)."""
    B, N, D = feats_t.shape
    D_pad = _round_up(D, 128)          # lane-tile aligned per-candidate slabs
    ND = N * D_pad
    itemsize = jnp.dtype(feats_t.dtype).itemsize

    # --- VMEM-aware block sizing ---------------------------------------------
    # Per-TC VMEM: 128 MiB (v5e/v6e) or 64 MiB (v7x). Leave headroom for regalloc,
    # pipeline machinery and the tiny label/output blocks.
    vmem_cap = 64 * 1024 * 1024
    try:
        info = pltpu.get_tpu_info()
        vmem_cap = int(getattr(info, "vmem_capacity_bytes", vmem_cap))
    except Exception:
        pass
    vmem_limit = min(100 * 1024 * 1024, (vmem_cap * 3) // 4)   # ~96 MiB v5e/v6e, ~48 MiB v7x
    vmem_budget = (vmem_limit * 4) // 5

    # Per-row working set: 2 feats inputs x 2 pipeline buffers (native dtype) plus
    # in-kernel f32 temporaries (2 keys + a few live slabs/products) plus labels.
    per_row_bytes = 4 * ND * itemsize + 10 * D_pad * 4 + 16
    row_in_bytes = ND * itemsize
    bb_vmem = max(8, (vmem_budget // per_row_bytes) // 8 * 8)

    if block_b is not None:
        bb = _round_up(max(int(block_b), 8), 8)
    else:
        # Size by bytes-per-step (amortize ~0.35us/step) but keep the grid long
        # enough that the "parallel" axis feeds both v7x TensorCores.
        bb_floor = max(8, _round_up((1 * 1024 * 1024) // row_in_bytes, 8))  # >= ~1 MiB/input/step
        bb_pref = max(8, _round_up((2 * 1024 * 1024) // row_in_bytes, 8))   # ~2 MiB/input/step
        bb_grid4 = max(8, _round_up(-(-B // 4), 8))   # prefer >= 4 grid steps
        bb_grid2 = max(8, _round_up(-(-B // 2), 8))   # hard-ish: >= 2 grid steps (v7x megacore)
        bb = min(bb_pref, bb_grid4)
        bb = max(bb, min(bb_floor, bb_grid2))
    BB = max(8, min(bb, bb_vmem, _round_up(B, 8)))
    B_pad = _round_up(B, BB)
    num_tiles = B_pad // BB

    # --- Layout: pad D to a lane-tile multiple, flatten (N, D_pad) -> N*D_pad ---
    # Keep the native dtype in HBM (no wrapper upcast; bf16 inputs halve traffic).
    if D_pad != D:
        zpad = ((0, 0), (0, 0), (0, D_pad - D))
        feats_t = jnp.pad(feats_t, zpad)
        feats_s = jnp.pad(feats_s, zpad)
    ft2 = feats_t.reshape(B, ND)
    fs2 = feats_s.reshape(B, ND)
    ans2 = answer_label.astype(jnp.int32).reshape(B, 1)
    rat2 = rationale_label.astype(jnp.int32).reshape(B, 1)
    if B_pad != B:
        bpad = ((0, B_pad - B), (0, 0))
        ft2 = jnp.pad(ft2, bpad)
        fs2 = jnp.pad(fs2, bpad)
        ans2 = jnp.pad(ans2, bpad)
        rat2 = jnp.pad(rat2, bpad)

    kernel = functools.partial(_infonce_kernel, nce_t=float(nce_t), n_cand=N,
                               d_pad=D_pad, true_b=B, block_b=BB)

    partials = pl.pallas_call(
        kernel,
        out_shape=jax.ShapeDtypeStruct((num_tiles, 8, 128), jnp.float32),
        grid_spec=pltpu.PrefetchScalarGridSpec(
            num_scalar_prefetch=0,
            grid=(num_tiles,),
            in_specs=[
                pl.BlockSpec((BB, 1), lambda i: (i, 0)),    # answer labels
                pl.BlockSpec((BB, 1), lambda i: (i, 0)),    # rationale labels
                pl.BlockSpec((BB, ND), lambda i: (i, 0)),   # feats_t (flattened, D padded)
                pl.BlockSpec((BB, ND), lambda i: (i, 0)),   # feats_s (flattened, D padded)
            ],
            out_specs=pl.BlockSpec((1, 8, 128), lambda i: (i, 0, 0)),
        ),
        compiler_params=pltpu.CompilerParams(
            dimension_semantics=("parallel",),   # independent tiles -> both TCs on v7x
            vmem_limit_bytes=int(vmem_limit),
        ),
    )(ans2, rat2, ft2, fs2)

    sums = jnp.sum(partials, axis=0)  # (8, 128): cheap cross-tile reduction in JAX
    inv_b = jnp.float32(1.0 / B)
    loss_s = sums[0, 0] * inv_b
    loss_t = sums[0, 1] * inv_b
    pmax_s = sums[0, 2] * inv_b
    acc_s = sums[0, 3] * inv_b

    loss = (loss_s + loss_t)[None]  # shape (1,), mirrors loss[None] in torch
    # TODO(synk): torch returns .item() host floats in the stats dict; here they stay jnp scalars.
    stats = {"nce_2": loss_s + loss_t, "ncep_2": pmax_s, "nceacc_2": acc_s}
    return loss * beta_2, stats


def _reference(feats_t, feats_s, ans, rat, nce_t, beta_2):
    """Pure-JAX reference reproducing the PyTorch forward."""
    B = feats_t.shape[0]
    idx = jnp.arange(B)
    key_s = feats_s[idx, rat]  # (B, D)
    key_t = feats_t[idx, ans]  # (B, D)
    logits_s = jnp.einsum("bnd,bd->bn", feats_t, key_s) / nce_t
    logits_t = jnp.einsum("bnd,bd->bn", feats_s, key_t) / nce_t

    def ce(logits, labels):
        lse = jax.scipy.special.logsumexp(logits, axis=-1)
        return jnp.mean(lse - logits[idx, labels])

    loss_s = ce(logits_s, ans)
    loss_t = ce(logits_t, rat)
    p_s = jax.nn.softmax(logits_s, axis=-1)
    pmax_s = jnp.mean(jnp.max(p_s, axis=-1))
    acc_s = jnp.mean((jnp.argmax(p_s, axis=-1) == ans).astype(jnp.float32))
    loss = (loss_s + loss_t)[None]
    return loss * beta_2, {"nce_2": loss_s + loss_t, "ncep_2": pmax_s, "nceacc_2": acc_s}


if __name__ == "__main__":
    # opt config (compile-time constants)
    NCE_T = 0.07
    BETA_2 = 0.5

    # Small demo shapes (VCR-style: 4 answer candidates).
    B, N, D = 2, 4, 32
    key = jax.random.PRNGKey(0)
    k_ft, k_fs, k_a, k_r = jax.random.split(key, 4)
    feats_t = jax.random.normal(k_ft, (B, N, D), dtype=jnp.float32)
    feats_s = jax.random.normal(k_fs, (B, N, D), dtype=jnp.float32)
    answer_label = jax.random.randint(k_a, (B,), 0, N, dtype=jnp.int32)
    rationale_label = jax.random.randint(k_r, (B,), 0, N, dtype=jnp.int32)

    loss, stats = infonce_loss_2(
        feats_t, feats_s, answer_label, rationale_label, nce_t=NCE_T, beta_2=BETA_2
    )
    loss = jax.block_until_ready(loss)
    stats = {k: jax.block_until_ready(v) for k, v in stats.items()}

    ref_loss, ref_stats = _reference(
        feats_t, feats_s, answer_label, rationale_label, NCE_T, BETA_2
    )
    assert jnp.allclose(loss, ref_loss, rtol=1e-4, atol=1e-4), (loss, ref_loss)
    for k in stats:
        assert jnp.allclose(stats[k], ref_stats[k], rtol=1e-4, atol=1e-4), (k, stats[k], ref_stats[k])

    # Second check: multi-tile grid (B not a multiple of the block) + padding mask path.
    B2 = 20
    k_ft, k_fs, k_a, k_r = jax.random.split(jax.random.PRNGKey(1), 4)
    feats_t2 = jax.random.normal(k_ft, (B2, N, D), dtype=jnp.float32)
    feats_s2 = jax.random.normal(k_fs, (B2, N, D), dtype=jnp.float32)
    ans_l2 = jax.random.randint(k_a, (B2,), 0, N, dtype=jnp.int32)
    rat_l2 = jax.random.randint(k_r, (B2,), 0, N, dtype=jnp.int32)

    loss2, stats2 = infonce_loss_2(
        feats_t2, feats_s2, ans_l2, rat_l2, nce_t=NCE_T, beta_2=BETA_2, block_b=8
    )
    loss2 = jax.block_until_ready(loss2)
    stats2 = {k: jax.block_until_ready(v) for k, v in stats2.items()}

    ref_loss2, ref_stats2 = _reference(feats_t2, feats_s2, ans_l2, rat_l2, NCE_T, BETA_2)
    assert jnp.allclose(loss2, ref_loss2, rtol=1e-4, atol=1e-4), (loss2, ref_loss2)
    for k in stats2:
        assert jnp.allclose(stats2[k], ref_stats2[k], rtol=1e-4, atol=1e-4), (k, stats2[k], ref_stats2[k])

    print("KERNEL_OK")
</pallas_src>

<mosaic_0001>
module attributes {stable_mosaic.version = 11 : i64} {
  func.func @_infonce_kernel(%arg0: i32, %arg1: memref<8x1xi32, #tpu.memory_space<vmem>>, %arg2: memref<8x1xi32, #tpu.memory_space<vmem>>, %arg3: memref<8x512xf32, #tpu.memory_space<vmem>>, %arg4: memref<8x512xf32, #tpu.memory_space<vmem>>, %arg5: memref<1x8x128xf32, #tpu.memory_space<vmem>>) attributes {dimension_semantics = [#tpu.dimension_semantics<parallel>], iteration_bounds = array<i64: 1>, scalar_prefetch = 0 : i64, scratch_operands = 0 : i64, tpu.core_type = #tpu.core_type<tc>, window_params = [{transform_indices = @transform_0, window_bounds = array<i64: 8, 1>}, {transform_indices = @transform_1, window_bounds = array<i64: 8, 1>}, {transform_indices = @transform_2, window_bounds = array<i64: 8, 512>}, {transform_indices = @transform_3, window_bounds = array<i64: 8, 512>}, {transform_indices = @transform_4, window_bounds = array<i64: 1, 8, 128>}]} {
    %c0 = arith.constant 0 : index
    %c0_0 = arith.constant 0 : index
    %0 = vector.load %arg1[%c0, %c0_0] : memref<8x1xi32, #tpu.memory_space<vmem>>, vector<8x1xi32>
    %c0_1 = arith.constant 0 : index
    %c0_2 = arith.constant 0 : index
    %1 = vector.load %arg2[%c0_1, %c0_2] : memref<8x1xi32, #tpu.memory_space<vmem>>, vector<8x1xi32>
    %c0_3 = arith.constant 0 : index
    %c0_4 = arith.constant 0 : index
    %2 = vector.load %arg4[%c0_3, %c0_4] : memref<8x512xf32, #tpu.memory_space<vmem>>, vector<8x128xf32>
    %c0_5 = arith.constant 0 : index
    %c0_6 = arith.constant 0 : index
    %3 = vector.load %arg3[%c0_5, %c0_6] : memref<8x512xf32, #tpu.memory_space<vmem>>, vector<8x128xf32>
    %c1_i32 = arith.constant 1 : i32
    %4 = vector.broadcast %c1_i32 : i32 to vector<8x1xi32>
    %5 = arith.cmpi eq, %1, %4 : vector<8x1xi32>
    %c0_7 = arith.constant 0 : index
    %c128 = arith.constant 128 : index
    %6 = vector.load %arg4[%c0_7, %c128] : memref<8x512xf32, #tpu.memory_space<vmem>>, vector<8x128xf32>
    %7 = vector.shape_cast %5 : vector<8x1xi1> to vector<8x1xi1>
    %8 = vector.broadcast %7 : vector<8x1xi1> to vector<8x128xi1>
    %9 = arith.select %8, %6, %2 : vector<8x128xi1>, vector<8x128xf32>
    %c1_i32_8 = arith.constant 1 : i32
    %10 = vector.broadcast %c1_i32_8 : i32 to vector<8x1xi32>
    %11 = arith.cmpi eq, %0, %10 : vector<8x1xi32>
    %c0_9 = arith.constant 0 : index
    %c128_10 = arith.constant 128 : index
    %12 = vector.load %arg3[%c0_9, %c128_10] : memref<8x512xf32, #tpu.memory_space<vmem>>, vector<8x128xf32>
    %13 = vector.shape_cast %11 : vector<8x1xi1> to vector<8x1xi1>
    %14 = vector.broadcast %13 : vector<8x1xi1> to vector<8x128xi1>
    %15 = arith.select %14, %12, %3 : vector<8x128xi1>, vector<8x128xf32>
    %c2_i32 = arith.constant 2 : i32
    %16 = vector.broadcast %c2_i32 : i32 to vector<8x1xi32>
    %17 = arith.cmpi eq, %1, %16 : vector<8x1xi32>
    %c0_11 = arith.constant 0 : index
    %c256 = arith.constant 256 : index
    %18 = vector.load %arg4[%c0_11, %c256] : memref<8x512xf32, #tpu.memory_space<vmem>>, vector<8x128xf32>
    %19 = vector.shape_cast %17 : vector<8x1xi1> to vector<8x1xi1>
    %20 = vector.broadcast %19 : vector<8x1xi1> to vector<8x128xi1>
    %21 = arith.select %20, %18, %9 : vector<8x128xi1>, vector<8x128xf32>
    %c2_i32_12 = arith.constant 2 : i32
    %22 = vector.broadcast %c2_i32_12 : i32 to vector<8x1xi32>
    %23 = arith.cmpi eq, %0, %22 : vector<8x1xi32>
    %c0_13 = arith.constant 0 : index
    %c256_14 = arith.constant 256 : index
    %24 = vector.load %arg3[%c0_13, %c256_14] : memref<8x512xf32, #tpu.memory_space<vmem>>, vector<8x128xf32>
    %25 = vector.shape_cast %23 : vector<8x1xi1> to vector<8x1xi1>
    %26 = vector.broadcast %25 : vector<8x1xi1> to vector<8x128xi1>
    %27 = arith.select %26, %24, %15 : vector<8x128xi1>, vector<8x128xf32>
    %c3_i32 = arith.constant 3 : i32
    %28 = vector.broadcast %c3_i32 : i32 to vector<8x1xi32>
    %29 = arith.cmpi eq, %1, %28 : vector<8x1xi32>
    %c0_15 = arith.constant 0 : index
    %c384 = arith.constant 384 : index
    %30 = vector.load %arg4[%c0_15, %c384] : memref<8x512xf32, #tpu.memory_space<vmem>>, vector<8x128xf32>
    %31 = vector.shape_cast %29 : vector<8x1xi1> to vector<8x1xi1>
    %32 = vector.broadcast %31 : vector<8x1xi1> to vector<8x128xi1>
    %33 = arith.select %32, %30, %21 : vector<8x128xi1>, vector<8x128xf32>
    %c3_i32_16 = arith.constant 3 : i32
    %34 = vector.broadcast %c3_i32_16 : i32 to vector<8x1xi32>
    %35 = arith.cmpi eq, %0, %34 : vector<8x1xi32>
    %c0_17 = arith.constant 0 : index
    %c384_18 = arith.constant 384 : index
    %36 = vector.load %arg3[%c0_17, %c384_18] : memref<8x512xf32, #tpu.memory_space<vmem>>, vector<8x128xf32>
    %37 = vector.shape_cast %35 : vector<8x1xi1> to vector<8x1xi1>
    %38 = vector.broadcast %37 : vector<8x1xi1> to vector<8x128xi1>
    %39 = arith.select %38, %36, %27 : vector<8x128xi1>, vector<8x128xf32>
    %c0_19 = arith.constant 0 : index
    %c0_20 = arith.constant 0 : index
    %40 = vector.load %arg3[%c0_19, %c0_20] : memref<8x512xf32, #tpu.memory_space<vmem>>, vector<8x128xf32>
    %c0_21 = arith.constant 0 : index
    %c0_22 = arith.constant 0 : index
    %41 = vector.load %arg4[%c0_21, %c0_22] : memref<8x512xf32, #tpu.memory_space<vmem>>, vector<8x128xf32>
    %42 = arith.mulf %40, %33 : vector<8x128xf32>
    %cst = arith.constant dense<0.000000e+00> : vector<8xf32>
    %43 = vector.multi_reduction <add>, %42, %cst [1] : vector<8x128xf32> to vector<8xf32>
    %44 = vector.shape_cast %43 : vector<8xf32> to vector<8x1xf32>
    %cst_23 = arith.constant 14.2857141 : f32
    %45 = vector.broadcast %cst_23 : f32 to vector<8x1xf32>
    %46 = arith.mulf %44, %45 : vector<8x1xf32>
    %47 = arith.mulf %41, %39 : vector<8x128xf32>
    %cst_24 = arith.constant dense<0.000000e+00> : vector<8xf32>
    %48 = vector.multi_reduction <add>, %47, %cst_24 [1] : vector<8x128xf32> to vector<8xf32>
    %49 = vector.shape_cast %48 : vector<8xf32> to vector<8x1xf32>
    %cst_25 = arith.constant 14.2857141 : f32
    %50 = vector.broadcast %cst_25 : f32 to vector<8x1xf32>
    %51 = arith.mulf %49, %50 : vector<8x1xf32>
    %c0_26 = arith.constant 0 : index
    %c128_27 = arith.constant 128 : index
    %52 = vector.load %arg3[%c0_26, %c128_27] : memref<8x512xf32, #tpu.memory_space<vmem>>, vector<8x128xf32>
    %c0_28 = arith.constant 0 : index
    %c128_29 = arith.constant 128 : index
    %53 = vector.load %arg4[%c0_28, %c128_29] : memref<8x512xf32, #tpu.memory_space<vmem>>, vector<8x128xf32>
    %54 = arith.mulf %52, %33 : vector<8x128xf32>
    %cst_30 = arith.constant dense<0.000000e+00> : vector<8xf32>
    %55 = vector.multi_reduction <add>, %54, %cst_30 [1] : vector<8x128xf32> to vector<8xf32>
    %56 = vector.shape_cast %55 : vector<8xf32> to vector<8x1xf32>
    %cst_31 = arith.constant 14.2857141 : f32
    %57 = vector.broadcast %cst_31 : f32 to vector<8x1xf32>
    %58 = arith.mulf %56, %57 : vector<8x1xf32>
    %59 = arith.mulf %53, %39 : vector<8x128xf32>
    %cst_32 = arith.constant dense<0.000000e+00> : vector<8xf32>
    %60 = vector.multi_reduction <add>, %59, %cst_32 [1] : vector<8x128xf32> to vector<8xf32>
    %61 = vector.shape_cast %60 : vector<8xf32> to vector<8x1xf32>
    %cst_33 = arith.constant 14.2857141 : f32
    %62 = vector.broadcast %cst_33 : f32 to vector<8x1xf32>
    %63 = arith.mulf %61, %62 : vector<8x1xf32>
    %c0_34 = arith.constant 0 : index
    %c256_35 = arith.constant 256 : index
    %64 = vector.load %arg3[%c0_34, %c256_35] : memref<8x512xf32, #tpu.memory_space<vmem>>, vector<8x128xf32>
    %c0_36 = arith.constant 0 : index
    %c256_37 = arith.constant 256 : index
    %65 = vector.load %arg4[%c0_36, %c256_37] : memref<8x512xf32, #tpu.memory_space<vmem>>, vector<8x128xf32>
    %66 = arith.mulf %64, %33 : vector<8x128xf32>
    %cst_38 = arith.constant dense<0.000000e+00> : vector<8xf32>
    %67 = vector.multi_reduction <add>, %66, %cst_38 [1] : vector<8x128xf32> to vector<8xf32>
    %68 = vector.shape_cast %67 : vector<8xf32> to vector<8x1xf32>
    %cst_39 = arith.constant 14.2857141 : f32
    %69 = vector.broadcast %cst_39 : f32 to vector<8x1xf32>
    %70 = arith.mulf %68, %69 : vector<8x1xf32>
    %71 = arith.mulf %65, %39 : vector<8x128xf32>
    %cst_40 = arith.constant dense<0.000000e+00> : vector<8xf32>
    %72 = vector.multi_reduction <add>, %71, %cst_40 [1] : vector<8x128xf32> to vector<8xf32>
    %73 = vector.shape_cast %72 : vector<8xf32> to vector<8x1xf32>
    %cst_41 = arith.constant 14.2857141 : f32
    %74 = vector.broadcast %cst_41 : f32 to vector<8x1xf32>
    %75 = arith.mulf %73, %74 : vector<8x1xf32>
    %c0_42 = arith.constant 0 : index
    %c384_43 = arith.constant 384 : index
    %76 = vector.load %arg3[%c0_42, %c384_43] : memref<8x512xf32, #tpu.memory_space<vmem>>, vector<8x128xf32>
    %c0_44 = arith.constant 0 : index
    %c384_45 = arith.constant 384 : index
    %77 = vector.load %arg4[%c0_44, %c384_45] : memref<8x512xf32, #tpu.memory_space<vmem>>, vector<8x128xf32>
    %78 = arith.mulf %76, %33 : vector<8x128xf32>
    %cst_46 = arith.constant dense<0.000000e+00> : vector<8xf32>
    %79 = vector.multi_reduction <add>, %78, %cst_46 [1] : vector<8x128xf32> to vector<8xf32>
    %80 = vector.shape_cast %79 : vector<8xf32> to vector<8x1xf32>
    %cst_47 = arith.constant 14.2857141 : f32
    %81 = vector.broadcast %cst_47 : f32 to vector<8x1xf32>
    %82 = arith.mulf %80, %81 : vector<8x1xf32>
    %83 = arith.mulf %77, %39 : vector<8x128xf32>
    %cst_48 = arith.constant dense<0.000000e+00> : vector<8xf32>
    %84 = vector.multi_reduction <add>, %83, %cst_48 [1] : vector<8x128xf32> to vector<8xf32>
    %85 = vector.shape_cast %84 : vector<8xf32> to vector<8x1xf32>
    %cst_49 = arith.constant 14.2857141 : f32
    %86 = vector.broadcast %cst_49 : f32 to vector<8x1xf32>
    %87 = arith.mulf %85, %86 : vector<8x1xf32>
    %88 = arith.mulf %39, %33 : vector<8x128xf32>
    %cst_50 = arith.constant dense<0.000000e+00> : vector<8xf32>
    %89 = vector.multi_reduction <add>, %88, %cst_50 [1] : vector<8x128xf32> to vector<8xf32>
    %90 = vector.shape_cast %89 : vector<8xf32> to vector<8x1xf32>
    %cst_51 = arith.constant 14.2857141 : f32
    %91 = vector.broadcast %cst_51 : f32 to vector<8x1xf32>
    %92 = arith.mulf %90, %91 : vector<8x1xf32>
    %93 = arith.maximumf %46, %58 : vector<8x1xf32>
    %94 = arith.maximumf %93, %70 : vector<8x1xf32>
    %95 = arith.maximumf %94, %82 : vector<8x1xf32>
    %96 = arith.subf %46, %95 : vector<8x1xf32>
    %97 = math.exp %96 : vector<8x1xf32>
    %98 = arith.subf %58, %95 : vector<8x1xf32>
    %99 = math.exp %98 : vector<8x1xf32>
    %100 = arith.addf %97, %99 : vector<8x1xf32>
    %101 = arith.subf %70, %95 : vector<8x1xf32>
    %102 = math.exp %101 : vector<8x1xf32>
    %103 = arith.addf %100, %102 : vector<8x1xf32>
    %104 = arith.subf %82, %95 : vector<8x1xf32>
    %105 = math.exp %104 : vector<8x1xf32>
    %106 = arith.addf %103, %105 : vector<8x1xf32>
    %107 = arith.maximumf %51, %63 : vector<8x1xf32>
    %108 = arith.maximumf %107, %75 : vector<8x1xf32>
    %109 = arith.maximumf %108, %87 : vector<8x1xf32>
    %110 = arith.subf %51, %109 : vector<8x1xf32>
    %111 = math.exp %110 : vector<8x1xf32>
    %112 = arith.subf %63, %109 : vector<8x1xf32>
    %113 = math.exp %112 : vector<8x1xf32>
    %114 = arith.addf %111, %113 : vector<8x1xf32>
    %115 = arith.subf %75, %109 : vector<8x1xf32>
    %116 = math.exp %115 : vector<8x1xf32>
    %117 = arith.addf %114, %116 : vector<8x1xf32>
    %118 = arith.subf %87, %109 : vector<8x1xf32>
    %119 = math.exp %118 : vector<8x1xf32>
    %120 = arith.addf %117, %119 : vector<8x1xf32>
    %121 = math.log %106 : vector<8x1xf32>
    %122 = arith.addf %95, %121 : vector<8x1xf32>
    %123 = arith.subf %122, %92 : vector<8x1xf32>
    %124 = math.log %120 : vector<8x1xf32>
    %125 = arith.addf %109, %124 : vector<8x1xf32>
    %126 = arith.subf %125, %92 : vector<8x1xf32>
    %cst_52 = arith.constant 1.000000e+00 : f32
    %127 = vector.broadcast %cst_52 : f32 to vector<8x1xf32>
    %128 = arith.divf %127, %106 : vector<8x1xf32>
    %c4_i32 = arith.constant 4 : i32
    %129 = vector.broadcast %c4_i32 : i32 to vector<8x1xi32>
    %130 = arith.cmpf oeq, %82, %95 : vector<8x1xf32>
    %c3_i32_53 = arith.constant 3 : i32
    %131 = vector.broadcast %c3_i32_53 : i32 to vector<8x1xi32>
    %132 = arith.select %130, %131, %129 : vector<8x1xi1>, vector<8x1xi32>
    %133 = arith.cmpf oeq, %70, %95 : vector<8x1xf32>
    %c2_i32_54 = arith.constant 2 : i32
    %134 = vector.broadcast %c2_i32_54 : i32 to vector<8x1xi32>
    %135 = arith.select %133, %134, %132 : vector<8x1xi1>, vector<8x1xi32>
    %136 = arith.cmpf oeq, %58, %95 : vector<8x1xf32>
    %c1_i32_55 = arith.constant 1 : i32
    %137 = vector.broadcast %c1_i32_55 : i32 to vector<8x1xi32>
    %138 = arith.select %136, %137, %135 : vector<8x1xi1>, vector<8x1xi32>
    %139 = arith.cmpf oeq, %46, %95 : vector<8x1xf32>
    %c0_i32 = arith.constant 0 : i32
    %140 = vector.broadcast %c0_i32 : i32 to vector<8x1xi32>
    %141 = arith.select %139, %140, %138 : vector<8x1xi1>, vector<8x1xi32>
    %142 = arith.cmpi eq, %141, %0 : vector<8x1xi32>
    %143 = arith.extui %142 : vector<8x1xi1> to vector<8x1xi32>
    %144 = arith.sitofp %143 : vector<8x1xi32> to vector<8x1xf32>
    %c8_i32 = arith.constant 8 : i32
    %145 = arith.muli %arg0, %c8_i32 : i32
    %146 = tpu.iota {dimensions = array<i32: 0>} : vector<8x1xi32>
    %147 = vector.broadcast %145 : i32 to vector<8x1xi32>
    %148 = arith.addi %147, %146 : vector<8x1xi32>
    %c2_i32_56 = arith.constant 2 : i32
    %149 = vector.broadcast %c2_i32_56 : i32 to vector<8x1xi32>
    %150 = arith.cmpi slt, %148, %149 : vector<8x1xi32>
    %151 = arith.extui %150 : vector<8x1xi1> to vector<8x1xi32>
    %152 = arith.sitofp %151 : vector<8x1xi32> to vector<8x1xf32>
    %153 = arith.mulf %123, %152 : vector<8x1xf32>
    %154 = vector.shape_cast %153 : vector<8x1xf32> to vector<1x8x1xf32>
    %cst_57 = arith.constant dense<0.000000e+00> : vector<1xf32>
    %155 = vector.multi_reduction <add>, %154, %cst_57 [1, 2] : vector<1x8x1xf32> to vector<1xf32>
    %156 = vector.shape_cast %155 : vector<1xf32> to vector<1x1x1xf32>
    %157 = vector.extract %156[0, 0, 0] : f32 from vector<1x1x1xf32>
    %158 = arith.mulf %126, %152 : vector<8x1xf32>
    %159 = vector.shape_cast %158 : vector<8x1xf32> to vector<1x8x1xf32>
    %cst_58 = arith.constant dense<0.000000e+00> : vector<1xf32>
    %160 = vector.multi_reduction <add>, %159, %cst_58 [1, 2] : vector<1x8x1xf32> to vector<1xf32>
    %161 = vector.shape_cast %160 : vector<1xf32> to vector<1x1x1xf32>
    %162 = vector.extract %161[0, 0, 0] : f32 from vector<1x1x1xf32>
    %163 = arith.mulf %128, %152 : vector<8x1xf32>
    %164 = vector.shape_cast %163 : vector<8x1xf32> to vector<1x8x1xf32>
    %cst_59 = arith.constant dense<0.000000e+00> : vector<1xf32>
    %165 = vector.multi_reduction <add>, %164, %cst_59 [1, 2] : vector<1x8x1xf32> to vector<1xf32>
    %166 = vector.shape_cast %165 : vector<1xf32> to vector<1x1x1xf32>
    %167 = vector.extract %166[0, 0, 0] : f32 from vector<1x1x1xf32>
    %168 = arith.mulf %144, %152 : vector<8x1xf32>
    %169 = vector.shape_cast %168 : vector<8x1xf32> to vector<1x8x1xf32>
    %cst_60 = arith.constant dense<0.000000e+00> : vector<1xf32>
    %170 = vector.multi_reduction <add>, %169, %cst_60 [1, 2] : vector<1x8x1xf32> to vector<1xf32>
    %171 = vector.shape_cast %170 : vector<1xf32> to vector<1x1x1xf32>
    %172 = vector.extract %171[0, 0, 0] : f32 from vector<1x1x1xf32>
    %173 = tpu.iota {dimensions = array<i32: 1>} : vector<1x8x128xi32>
    %174 = tpu.iota {dimensions = array<i32: 2>} : vector<1x8x128xi32>
    %c0_i32_61 = arith.constant 0 : i32
    %175 = vector.broadcast %c0_i32_61 : i32 to vector<1x8x128xi32>
    %176 = arith.cmpi eq, %173, %175 : vector<1x8x128xi32>
    %c0_i32_62 = arith.constant 0 : i32
    %177 = vector.broadcast %c0_i32_62 : i32 to vector<1x8x128xi32>
    %178 = arith.cmpi eq, %174, %177 : vector<1x8x128xi32>
    %179 = arith.andi %176, %178 : vector<1x8x128xi1>
    %cst_63 = arith.constant 0.000000e+00 : f32
    %180 = vector.broadcast %157 : f32 to vector<1x8x128xf32>
    %181 = vector.broadcast %cst_63 : f32 to vector<1x8x128xf32>
    %182 = arith.select %179, %180, %181 : vector<1x8x128xi1>, vector<1x8x128xf32>
    %c1_i32_64 = arith.constant 1 : i32
    %183 = vector.broadcast %c1_i32_64 : i32 to vector<1x8x128xi32>
    %184 = arith.cmpi eq, %174, %183 : vector<1x8x128xi32>
    %185 = arith.andi %176, %184 : vector<1x8x128xi1>
    %cst_65 = arith.constant 0.000000e+00 : f32
    %186 = vector.broadcast %162 : f32 to vector<1x8x128xf32>
    %187 = vector.broadcast %cst_65 : f32 to vector<1x8x128xf32>
    %188 = arith.select %185, %186, %187 : vector<1x8x128xi1>, vector<1x8x128xf32>
    %189 = arith.addf %182, %188 : vector<1x8x128xf32>
    %c2_i32_66 = arith.constant 2 : i32
    %190 = vector.broadcast %c2_i32_66 : i32 to vector<1x8x128xi32>
    %191 = arith.cmpi eq, %174, %190 : vector<1x8x128xi32>
    %192 = arith.andi %176, %191 : vector<1x8x128xi1>
    %cst_67 = arith.constant 0.000000e+00 : f32
    %193 = vector.broadcast %167 : f32 to vector<1x8x128xf32>
    %194 = vector.broadcast %cst_67 : f32 to vector<1x8x128xf32>
    %195 = arith.select %192, %193, %194 : vector<1x8x128xi1>, vector<1x8x128xf32>
    %196 = arith.addf %189, %195 : vector<1x8x128xf32>
    %c3_i32_68 = arith.constant 3 : i32
    %197 = vector.broadcast %c3_i32_68 : i32 to vector<1x8x128xi32>
    %198 = arith.cmpi eq, %174, %197 : vector<1x8x128xi32>
    %199 = arith.andi %176, %198 : vector<1x8x128xi1>
    %cst_69 = arith.constant 0.000000e+00 : f32
    %200 = vector.broadcast %172 : f32 to vector<1x8x128xf32>
    %201 = vector.broadcast %cst_69 : f32 to vector<1x8x128xf32>
    %202 = arith.select %199, %200, %201 : vector<1x8x128xi1>, vector<1x8x128xf32>
    %203 = arith.addf %196, %202 : vector<1x8x128xf32>
    %c0_70 = arith.constant 0 : index
    %c0_71 = arith.constant 0 : index
    %c0_72 = arith.constant 0 : index
    %204 = vector.load %arg5[%c0_70, %c0_71, %c0_72] : memref<1x8x128xf32, #tpu.memory_space<vmem>>, vector<1x8x128xf32>
    tpu.vector_store %arg5[%c0_70, %c0_71, %c0_72], %203 {strides = array<i32>} : memref<1x8x128xf32, #tpu.memory_space<vmem>>, vector<1x8x128xf32>,
    return
  }
  func.func @transform_0(%arg0: i32) -> (i32, i32) {
    %c0_i32 = arith.constant 0 : i32
    %c0_i32_0 = arith.constant 0 : i32
    return %arg0, %c0_i32 : i32, i32
  }
  func.func @transform_1(%arg0: i32) -> (i32, i32) {
    %c0_i32 = arith.constant 0 : i32
    %c0_i32_0 = arith.constant 0 : i32
    return %arg0, %c0_i32 : i32, i32
  }
  func.func @transform_2(%arg0: i32) -> (i32, i32) {
    %c0_i32 = arith.constant 0 : i32
    %c0_i32_0 = arith.constant 0 : i32
    return %arg0, %c0_i32 : i32, i32
  }
  func.func @transform_3(%arg0: i32) -> (i32, i32) {
    %c0_i32 = arith.constant 0 : i32
    %c0_i32_0 = arith.constant 0 : i32
    return %arg0, %c0_i32 : i32, i32
  }
  func.func @transform_4(%arg0: i32) -> (i32, i32, i32) {
    %c0_i32 = arith.constant 0 : i32
    %c0_i32_0 = arith.constant 0 : i32
    %c0_i32_1 = arith.constant 0 : i32
    return %arg0, %c0_i32, %c0_i32_0 : i32, i32, i32
  }
}

</mosaic_0001>

<bundles_post_ra>
// kernel: tpu_custom_call.1
= control target key start
LH: loop header
LB: loop body
LE: loop exit
PB: predicated region body
PF: predicated region fallthrough
CT: control target
= control target key end

     0   :  { %9 = vsyncpa [#allocation3], 0  ;;  %s510_s0 = inlined_call_operand.vmem [shape: s32[8,1], index: 0, kind: input, shape index: {}]   ;;  %s511_s1 = inlined_call_operand.vmem [shape: s32[8,1], index: 1, kind: input, shape index: {}]   ;;  %s512_s2 = inlined_call_operand.hbm [shape: f32[8,512], index: 2, kind: input, shape index: {}]   ;;  %s513_s3 = inlined_call_operand.hbm [shape: f32[8,512], index: 3, kind: input, shape index: {}]   ;;  %s514_s4 = inlined_call_operand.hbm [shape: f32[1,8,128], index: 4, kind: output, shape index: {}]  }
   0x1   :  { %10 = vsyncpa [#allocation6], 0 }
   0x2   :  { %11 = vsyncpa [#allocation4], 0  ;;  %s391_s15 = smov [#allocation2]   ;;  %s392_s17 = smov [#allocation5]  }
   0x3   :  { %s22_s16 = sshll.u32 %s391_s15, 4  ;;  %s32_s18 = sshll.u32 %s392_s17, 4  ;;  %s23_s16 = int_to_ptr.vmem [resolvable:$true] %s22_s16  ;;  %s33_s18 = int_to_ptr.vmem [resolvable:$true] %s32_s18 }
   0x4   :  { %s319_s21 = scalar_lea.hbm %s512_s2, 512 }
   0x5   :  { %p320_p0 = scmp.ne.s32.totalorder %s512_s2, %s319_s21  ;;  %p323_p1 = scmp.lt.u32.totalorder %s319_s21, %s512_s2 }
   0x7   :  { %p325_p2 = pnand %p323_p1, %p320_p0 }
   0x9   :  { %328 = shalt.err (!%p325_p2)
}
   0xa   :  { %s329_s26 = scalar_lea.vmem %s23_s16, 512  ;;  %p334_p4 = scmp.lt.s32.totalorder %s23_s16, %s23_s16 }
   0xb   :  { %p330_p3 = scmp.ne.s32.totalorder %s23_s16, %s329_s26  ;;  %p335_p5 = scmp.lt.s32.totalorder %s329_s26, %s329_s26 }
   0xd   :  { %p336_p6 = por %p335_p5, %p334_p4 }
   0xf   :  { %p337_p7 = pnand %p336_p6, %p330_p3 }
  0x11   :  { %340 = shalt.err (!%p337_p7)
}
  0x12   :  { %25 = dma.hbm_to_vmem [thread:$0]  %s512_s2, 512, %s23_s16, [#allocation3]  }
  0x13   :  { %s341_s5 = scalar_lea.hbm %s513_s3, 512 }
  0x14   :  { %p342_p8 = scmp.ne.s32.totalorder %s513_s3, %s341_s5  ;;  %p345_p9 = scmp.lt.u32.totalorder %s341_s5, %s513_s3 }
  0x16   :  { %p347_p10 = pnand %p345_p9, %p342_p8 }
  0x18   :  { %350 = shalt.err (!%p347_p10)
}
  0x19   :  { %s351_s10 = scalar_lea.vmem %s33_s18, 512  ;;  %p356_p12 = scmp.lt.s32.totalorder %s33_s18, %s33_s18 }
  0x1a   :  { %p352_p11 = scmp.ne.s32.totalorder %s33_s18, %s351_s10  ;;  %p357_p13 = scmp.lt.s32.totalorder %s351_s10, %s351_s10 }
  0x1c   :  { %p358_p0 = por %p357_p13, %p356_p12 }
  0x1e   :  { %p359_p1 = pnand %p358_p0, %p352_p11 }
  0x20   :  { %362 = shalt.err (!%p359_p1)
}
  0x21   :  { %35 = dma.hbm_to_vmem [thread:$0]  %s513_s3, 512, %s33_s18, [#allocation6]  }
  0x22   :  { %385 = dma.done.wait [#allocation3], 512  }
  0x23   :  { %386 = vsyncadd [#allocation3], 4294966784 }
  0x24   :  { %387 = dma.done.wait [#allocation6], 512  }
  0x25   :  { %388 = vsyncadd [#allocation6], 4294966784  ;;  %v393_v0 = vmov 0   ;;  %v43_v1 = vld [vmem:[%s511_s1] sm:$0xff]  ;;  %v44_v11 = vld [vmem:[#allocation5] sm:$0xff]  ;;  %s396_s17 = smov [#allocation7]  }
  0x26   :  { %296 = vset.pattern.permute.xlu1 %v393_v0  ;;  %295 = vset.pattern.permute.xlu0 %v393_v0  ;;  %v452_v2 = vld [vmem:[%s510_s0] sm:$0xff]  ;;  %vm62_vm0 = vcmp.eq.s32.totalorder %v43_v1, 2  ;;  %vm46_vm1 = vcmp.eq.s32.totalorder %v43_v1, 1  ;;  %vm78_vm5 = vcmp.eq.s32.totalorder %v43_v1, 3  ;;  %v45_v12 = vld [vmem:[#allocation2] sm:$0xff]  ;;  %v55_v13 = vld [vmem:[#allocation2 + $0x8] sm:$0xff] }
  0x27   :  { %vm70_vm2 = vcmp.eq.s32.totalorder %v452_v2, 2  ;;  %vm54_vm3 = vcmp.eq.s32.totalorder %v452_v2, 1  ;;  %v64_v3 = vsel %vm62_vm0, 1, %v393_v0  ;;  %v48_v4 = vsel %vm46_vm1, 1, %v393_v0  ;;  %v47_v14 = vld [vmem:[#allocation5 + $0x8] sm:$0xff]  ;;  %v71_v18 = vld [vmem:[#allocation2 + $0x10] sm:$0xff] }
  0x28   :  { %66 = vperm.xlu1 %296, %v64_v3   ;;  %50 = vperm.xlu0 %295, %v48_v4   ;;  %v72_v5 = vsel %vm70_vm2, 1, %v393_v0  ;;  %v56_v6 = vsel %vm54_vm3, 1, %v393_v0  ;;  %vm86_vm4 = vcmp.eq.s32.totalorder %v452_v2, 3  ;;  %v80_v8 = vsel %vm78_vm5, 1, %v393_v0  ;;  %v63_v20 = vld [vmem:[#allocation5 + $0x10] sm:$0xff]  ;;  %v87_v21 = vld [vmem:[#allocation2 + $0x18] sm:$0xff] }
  0x29   :  { %v88_v7 = vsel %vm86_vm4, 1, %v393_v0  ;;  %v79_v22 = vld [vmem:[#allocation5 + $0x18] sm:$0xff]  ;;  %vm196_vm1 = vcmask 7168   ;;  %s269_s18 = sshll.u32 %s396_s17, 4  ;;  %s270_s18 = int_to_ptr.vmem [resolvable:$true] %s269_s18 }
  0x2a   :  { %s363_s19 = scalar_lea.vmem %s270_s18, 128  ;;  %p368_p3 = scmp.lt.s32.totalorder %s270_s18, %s270_s18 }
  0x2b   :  { %p364_p2 = scmp.ne.s32.totalorder %s270_s18, %s363_s19  ;;  %p369_p4 = scmp.lt.s32.totalorder %s363_s19, %s363_s19 }
  0x2c   :  { %74 = vperm.xlu1 %296, %v72_v5   ;;  %58 = vperm.xlu0 %295, %v56_v6  }
  0x2d   :  { %p370_p5 = por %p369_p4, %p368_p3 }
  0x2f   :  { %p371_p6 = pnand %p370_p5, %p364_p2 }
  0x30   :  { %90 = vperm.xlu1 %296, %v88_v7   ;;  %82 = vperm.xlu0 %295, %v80_v8  }
  0xa7   :  { %v67_v9 = vpop.permute.xlu1 %66  ;;  %v51_v10 = vpop.permute.xlu0 %50 }
  0xa8   :  { %vm52_vm6 = vcmp.eq.s32.totalorder %v51_v10, 1  ;;  %vm68_vm8 = vcmp.eq.s32.totalorder %v67_v9, 1 }
  0xa9   :  { %v53_v19 = vsel %vm52_vm6, %v47_v14, %v44_v11 }
  0xaa   :  { %v69_v26 = vsel %vm68_vm8, %v63_v20, %v53_v19 }
  0xab   :  { %v75_v15 = vpop.permute.xlu1 %74  ;;  %v59_v16 = vpop.permute.xlu0 %58 }
  0xac   :  { %vm60_vm7 = vcmp.eq.s32.totalorder %v59_v16, 1  ;;  %vm76_vm9 = vcmp.eq.s32.totalorder %v75_v15, 1 }
  0xad   :  { %v61_v17 = vsel %vm60_vm7, %v55_v13, %v45_v12 }
  0xae   :  { %v77_v25 = vsel %vm76_vm9, %v71_v18, %v61_v17 }
  0xaf   :  { %v91_v23 = vpop.permute.xlu1 %90  ;;  %v83_v24 = vpop.permute.xlu0 %82 }
  0xb0   :  { %vm92_vm10 = vcmp.eq.s32.totalorder %v91_v23, 1  ;;  %vm84_vm11 = vcmp.eq.s32.totalorder %v83_v24, 1 }
  0xb1   :  { %v93_v27 = vsel %vm92_vm10, %v87_v21, %v77_v25  ;;  %v85_v28 = vsel %vm84_vm11, %v79_v22, %v69_v26  ;;  %v188_v26 = vlaneseq }
  0xb2   :  { %v98_v29 = vmul.f32 %v93_v27, %v44_v11  ;;  %v94_v30 = vmul.f32 %v85_v28, %v45_v12  ;;  %v110_v31 = vmul.f32 %v85_v28, %v71_v18  ;;  %v102_v32 = vmul.f32 %v85_v28, %v55_v13 }
  0xb3   :  { %v118_v33 = vmul.f32 %v87_v21, %v85_v28  ;;  %v106_v34 = vmul.f32 %v93_v27, %v47_v14  ;;  %v126_v35 = vmul.f32 %v93_v27, %v85_v28  ;;  %v114_v36 = vmul.f32 %v93_v27, %v63_v20 }
  0xb4   :  { %99 = vadd.xlane.f32.xlu1 %v98_v29  ;;  %95 = vadd.xlane.f32.xlu0 %v94_v30  ;;  %v122_v37 = vmul.f32 %v93_v27, %v79_v22  ;;  %v394_v28 = vmov 4   ;;  %v479_v30 = vshrl.u32 %v188_v26, 7 }
  0xb6   :  { %vm192_vm14 = vcmp.lt.s32.totalorder %v479_v30, 2  ;;  %vm242_vm3 = vcmp.eq.s32.totalorder %v479_v30, 0 }
  0xb8   :  { %111 = vadd.xlane.f32.xlu1 %v110_v31  ;;  %103 = vadd.xlane.f32.xlu0 %v102_v32 }
  0xbc   :  { %119 = vadd.xlane.f32.xlu1 %v118_v33  ;;  %107 = vadd.xlane.f32.xlu0 %v106_v34 }
  0xc0   :  { %127 = vadd.xlane.f32.xlu1 %v126_v35  ;;  %115 = vadd.xlane.f32.xlu0 %v114_v36 }
  0xc4   :  { %123 = vadd.xlane.f32.xlu0 %v122_v37 }
 0x141   :  { %v100_v38 = vpop.xlane.xlu1 %99  ;;  %v96_v39 = vpop.xlane.xlu0 %95 }
 0x142   :  { %v457_v42 = vmul.f32 14.285714, %v96_v39  ;;  %v101_v53 = vmul.f32 14.285714, %v100_v38 }
 0x145   :  { %v112_v40 = vpop.xlane.xlu1 %111  ;;  %v104_v41 = vpop.xlane.xlu0 %103 }
 0x146   :  { %v459_v43 = vmul.f32 14.285714, %v104_v41  ;;  %v461_v44 = vmul.f32 14.285714, %v112_v40  ;;  %v395_v40 = vmov 0.0  }
 0x147   :  { %v280_v41 = vsel %vm192_vm14, 1.0, %v395_v40 }
 0x148   :  { %v130_v45 = vmax.f32 %v457_v42, %v459_v43 }
 0x149   :  { %v120_v46 = vpop.xlane.xlu1 %119  ;;  %v108_v47 = vpop.xlane.xlu0 %107 }
 0x14a   :  { %v121_v48 = vmul.f32 14.285714, %v120_v46  ;;  %v131_v49 = vmax.f32 %v130_v45, %v461_v44  ;;  %v109_v51 = vmul.f32 14.285714, %v108_v47 }
 0x14c   :  { %v466_v50 = vmax.f32 %v131_v49, %v121_v48  ;;  %v148_v58 = vmax.f32 %v101_v53, %v109_v51 }
 0x14d   :  { %v116_v52 = vpop.xlane.xlu0 %115  ;;  %v128_v32 = vpop.xlane.xlu1 %127 }
 0x14e   :  { %v133_v54 = vsub.f32 %v457_v42, %v466_v50  ;;  %v136_v55 = vsub.f32 %v459_v43, %v466_v50  ;;  %v140_v56 = vsub.f32 %v461_v44, %v466_v50  ;;  %v144_v57 = vsub.f32 %v121_v48, %v466_v50 }
 0x14f   :  { %v117_v59 = vmul.f32 14.285714, %v116_v52  ;;  %vm176_vm12 = vcmp.eq.f32.partialorder %v121_v48, %v466_v50  ;;  %vm178_vm13 = vcmp.eq.f32.partialorder %v461_v44, %v466_v50  ;;  %v129_v35 = vmul.f32 14.285714, %v128_v32 }
 0x150   :  { %v134_v60 = vmul.f32 1.442695, %v133_v54  ;;  %v137_v61 = vmul.f32 1.442695, %v136_v55  ;;  %v141_v63 = vmul.f32 1.442695, %v140_v56  ;;  %vm180_vm15 = vcmp.eq.f32.partialorder %v459_v43, %v466_v50 }
 0x151   :  { %v124_v62 = vpop.xlane.xlu0 %123  ;;  %v149_v0 = vmax.f32 %v148_v58, %v117_v59  ;;  %v145_v3 = vmul.f32 1.442695, %v144_v57  ;;  %v177_v29 = vsel %vm176_vm12, 3, %v394_v28  ;;  %vm182_vm0 = vcmp.eq.f32.partialorder %v457_v42, %v466_v50 }
 0x152   :  { %v125_v1 = vmul.f32 14.285714, %v124_v62  ;;  %297 = vpow2.f32 %v134_v60  ;;  %v179_v33 = vsel %vm178_vm13, 2, %v177_v29 }
 0x153   :  { %299 = vpow2.f32 %v137_v61  ;;  %v181_v37 = vsel %vm180_vm15, 1, %v179_v33 }
 0x154   :  { %v150_v4 = vmax.f32 %v149_v0, %v125_v1  ;;  %301 = vpow2.f32 %v141_v63  ;;  %v183_v46 = vsel %vm182_vm0, 0, %v181_v37 }
 0x155   :  { %303 = vpow2.f32 %v145_v3  ;;  %vm184_vm2 = vcmp.eq.s32.totalorder %v183_v46, %v452_v2 }
 0x156   :  { %v151_v5 = vsub.f32 %v101_v53, %v150_v4  ;;  %v154_v6 = vsub.f32 %v109_v51, %v150_v4  ;;  %v158_v7 = vsub.f32 %v117_v59, %v150_v4  ;;  %v162_v8 = vsub.f32 %v125_v1, %v150_v4 }
 0x157   :  { %v279_v53 = vsel %vm184_vm2, 1.0, %v395_v40 }
 0x158   :  { %v152_v9 = vmul.f32 1.442695, %v151_v5  ;;  %v155_v10 = vmul.f32 1.442695, %v154_v6  ;;  %v159_v11 = vmul.f32 1.442695, %v158_v7  ;;  %v229_v56 = vmul.f32 %v280_v41, %v279_v53 }
 0x159   :  { %v163_v12 = vmul.f32 1.442695, %v162_v8 }
 0x15a   :  { %305 = vpow2.f32 %v152_v9  ;;  %v230_v42 = vsel %vm196_vm1, %v229_v56, 0.0 }
 0x15b   :  { %307 = vpow2.f32 %v155_v10 }
 0x15c   :  { %v298_v13 = vpop.eup %297  ;;  %309 = vpow2.f32 %v159_v11 }
 0x15d   :  { %v300_v14 = vpop.eup %299  ;;  %311 = vpow2.f32 %v163_v12 }
 0x15e   :  { %v139_v15 = vadd.f32 %v300_v14, %v298_v13  ;;  %v302_v16 = vpop.eup %301 }
 0x15f   :  { %v304_v18 = vpop.eup %303 }
 0x160   :  { %v143_v17 = vadd.f32 %v302_v16, %v139_v15 }
 0x162   :  { %v147_v19 = vadd.f32 %v304_v18, %v143_v17 }
 0x164   :  { %v306_v20 = vpop.eup %305  ;;  %313 = vlog2.f32 %v147_v19 }
 0x165   :  { %v308_v21 = vpop.eup %307  ;;  %315 = vrcp.f32 %v147_v19 }
 0x166   :  { %v157_v22 = vadd.f32 %v308_v21, %v306_v20  ;;  %v310_v23 = vpop.eup %309  ;;  %v241_v20 = vand.u32 127, %v188_v26 }
 0x167   :  { %v312_v25 = vpop.eup %311 }
 0x168   :  { %v161_v24 = vadd.f32 %v310_v23, %v157_v22  ;;  %vm243_vm4 = vcmp.eq.s32.totalorder %v241_v20, 0  ;;  %vm247_vm5 = vcmp.eq.s32.totalorder %v241_v20, 1  ;;  %vm252_vm7 = vcmp.eq.s32.totalorder %v241_v20, 2 }
 0x169   :  { %vm244_vm6 = vmand %vm242_vm3, %vm243_vm4  ;;  %vm257_vm9 = vcmp.eq.s32.totalorder %v241_v20, 3 }
 0x16a   :  { %v165_v27 = vadd.f32 %v312_v25, %v161_v24  ;;  %vm248_vm8 = vmand %vm242_vm3, %vm247_vm5 }
 0x16b   :  { %vm253_vm10 = vmand %vm242_vm3, %vm252_vm7 }
 0x16c   :  { %317 = vlog2.f32 %v165_v27  ;;  %vm258_vm11 = vmand %vm242_vm3, %vm257_vm9 }
 0x16e   :  { %v314_v31 = vpop.eup %313 }
 0x16f   :  { %v167_v34 = vmul.f32 0.6931472, %v314_v31  ;;  %v316_v39 = vpop.eup %315 }
 0x170   :  { %v218_v49 = vmul.f32 %v316_v39, %v280_v41 }
 0x171   :  { %v168_v36 = vadd.f32 %v167_v34, %v466_v50 }
 0x172   :  { %v219_v52 = vsel %vm196_vm1, %v218_v49, 0.0 }
 0x173   :  { %v169_v38 = vsub.f32 %v168_v36, %v129_v35 }
 0x175   :  { %v195_v45 = vmul.f32 %v280_v41, %v169_v38 }
 0x176   :  { %v318_v44 = vpop.eup %317 }
 0x177   :  { %v171_v47 = vmul.f32 0.6931472, %v318_v44  ;;  %v197_v48 = vsel %vm196_vm1, %v195_v45, 0.0 }
 0x178   :  { %198 = vadd.xlane.f32.xlu0 %v197_v48 }
 0x179   :  { %v172_v51 = vadd.f32 %v171_v47, %v150_v4 }
 0x17b   :  { %v173_v43 = vsub.f32 %v172_v51, %v129_v35 }
 0x17c   :  { %220 = vadd.xlane.f32.xlu0 %v219_v52 }
 0x17d   :  { %v207_v54 = vmul.f32 %v280_v41, %v173_v43 }
 0x17f   :  { %v208_v55 = vsel %vm196_vm1, %v207_v54, 0.0 }
 0x180   :  { %209 = vadd.xlane.f32.xlu1 %v208_v55 }
 0x184   :  { %231 = vadd.xlane.f32.xlu1 %v230_v42 }
 0x205   :  { %v199_v50 = vpop.xlane.xlu0 %198 }
 0x206   :  { %v200_v57 = vrot.slane %v199_v50, 4 }
 0x208   :  { %v201_v58 = vadd.f32 %v200_v57, %v199_v50 }
 0x209   :  { %v221_v59 = vpop.xlane.xlu0 %220 }
 0x20a   :  { %v202_v60 = vrot.slane %v201_v58, 2  ;;  %v222_v61 = vrot.slane %v221_v59, 4 }
 0x20c   :  { %v223_v62 = vadd.f32 %v222_v61, %v221_v59  ;;  %v203_v0 = vadd.f32 %v202_v60, %v201_v58 }
 0x20d   :  { %v210_v63 = vpop.xlane.xlu1 %209 }
 0x20e   :  { %v211_v2 = vrot.slane %v210_v63, 4  ;;  %v224_v1 = vrot.slane %v223_v62, 2  ;;  %v204_v3 = vrot.slane %v203_v0, 1 }
 0x210   :  { %v212_v4 = vadd.f32 %v211_v2, %v210_v63  ;;  %v225_v5 = vadd.f32 %v224_v1, %v223_v62  ;;  %v205_v7 = vadd.f32 %v204_v3, %v203_v0 }
 0x211   :  { %v232_v6 = vpop.xlane.xlu1 %231 }
 0x212   :  { %v213_v8 = vrot.slane %v212_v4, 2  ;;  %v233_v9 = vrot.slane %v232_v6, 4  ;;  %281 = vpush %v205_v7  ;;  %v226_v12 = vrot.slane %v225_v5, 1 }
 0x214   :  { %v234_v10 = vadd.f32 %v233_v9, %v232_v6  ;;  %v214_v11 = vadd.f32 %v213_v8, %v212_v4  ;;  %v227_v17 = vadd.f32 %v226_v12, %v225_v5 }
 0x216   :  { %v235_v13 = vrot.slane %v234_v10, 2  ;;  %v215_v14 = vrot.slane %v214_v11, 1 }
 0x218   :  { %v236_v15 = vadd.f32 %v235_v13, %v234_v10  ;;  %v216_v16 = vadd.f32 %v215_v14, %v214_v11 }
 0x21a   :  { %283 = vpush %v216_v16  ;;  %v237_v18 = vrot.slane %v236_v15, 1 }
 0x21b   :  { %285 = vpush %v227_v17 }
 0x21c   :  { %v238_v19 = vadd.f32 %v237_v18, %v236_v15 }
 0x21e   :  { %287 = vpush %v238_v19 }
 0x243   :  { %s282_s0 = spop %281 }
 0x244   :  { %v245_v21 = vstv %s282_s0 }
 0x245   :  { %v246_v23 = vsel %vm244_vm6, %v245_v21, 0.0 }
 0x24b   :  { %s284_s1 = spop %283 }
 0x24c   :  { %v249_v22 = vstv %s284_s1  ;;  %s286_s3 = spop %285 }
 0x24d   :  { %v250_v24 = vsel %vm248_vm8, %v249_v22, 0.0  ;;  %v254_v25 = vstv %s286_s3 }
 0x24e   :  { %v251_v26 = vadd.f32 %v250_v24, %v246_v23  ;;  %v255_v27 = vsel %vm253_vm10, %v254_v25, 0.0 }
 0x24f   :  { %s288_s16 = spop %287 }
 0x250   :  { %v256_v28 = vadd.f32 %v255_v27, %v251_v26  ;;  %v259_v29 = vstv %s288_s16 }
 0x251   :  { %v260_v31 = vsel %vm258_vm11, %v259_v29, 0.0 }
 0x252   :  { %v261_v32 = vadd.f32 %v260_v31, %v256_v28 }
 0x254   :  { %262 = vst [vmem:[#allocation7] sm:$0xff] %v261_v32 }
 0x255   :  { %374 = shalt.err (!%p371_p6)
}
 0x256   :  { %s375_s22 = scalar_lea.hbm %s514_s4, 128 }
 0x257   :  { %p376_p7 = scmp.ne.s32.totalorder %s514_s4, %s375_s22  ;;  %p379_p8 = scmp.lt.u32.totalorder %s375_s22, %s514_s4 }
 0x259   :  { %p381_p9 = pnand %p379_p8, %p376_p7 }
 0x25b   :  { %384 = shalt.err (!%p381_p9)
}
 0x25c   :  { %272 = dma.vmem_to_hbm [thread:$0]  %s270_s18, 128, %s514_s4, [#allocation4]  }
 0x25d   :  { %389 = dma.done.wait [#allocation4], 128  }
 0x25e   :  { %390 = vsyncadd [#allocation4], 4294967168 }
 0x25f   :  { %276 = vsyncpa [#allocation3], 1 }
 0x260   :  { %277 = vsyncpa [#allocation6], 1 }
 0x261   :  { %278 = vsyncpa [#allocation4], 1 }

</bundles_post_ra>
